<compile_context>
chip_gen: v7x
topology: tpu7x:2x2x1
jax: 0.10.0
libtpu: 0.0.40
codegen_flags: <defaults>
</compile_context>

<pallas_src>
import functools

import jax
import jax.numpy as jnp
import numpy as np
from jax.experimental import pallas as pl
from jax.experimental.pallas import tpu as pltpu

_LANES = 128
_MAX_SAMPLES_PER_BLOCK = 2048     # bounds per-sample accumulator scratch


def _soft_dice_kernel(p_ref, t_ref, loss_ref,
                      rmax_ref, cg_ref, cpg_ref, cp_ref, inter_ref, s12_ref,
                      *, channels, chw, row_block, mask_needed):
    """Grid = (batch_blocks, feature_chunks); feature axis innermost.

    p_ref / t_ref : (B, row_block, 128) VMEM chunk of B samples.
    loss_ref      : (B, 1, 1) per-sample loss (written on last feature chunk).
    Scratch (per-sample accumulators, persist across the feature axis):
      rmax  f32  running max(targets)
      cg    i32  count(targets == running max)
      cpg   i32  count(targets == running max  AND  probs > 0.5)
      cp    i32  count(probs > 0.5)
      inter f32  sum(probs * targets)
      s12   f32  sum(probs) + sum(targets)
    """
    k = pl.program_id(1)
    bsz = p_ref.shape[0]

    @pl.when(k == 0)
    def _init():
        rmax_ref[...] = jnp.full(rmax_ref.shape, -jnp.inf, rmax_ref.dtype)
        cg_ref[...] = jnp.zeros(cg_ref.shape, cg_ref.dtype)
        cpg_ref[...] = jnp.zeros(cpg_ref.shape, cpg_ref.dtype)
        cp_ref[...] = jnp.zeros(cp_ref.shape, cp_ref.dtype)
        inter_ref[...] = jnp.zeros(inter_ref.shape, inter_ref.dtype)
        s12_ref[...] = jnp.zeros(s12_ref.shape, s12_ref.dtype)

    m1 = p_ref[...].astype(jnp.float32)          # (B, row_block, 128)
    m2 = t_ref[...].astype(jnp.float32)

    if mask_needed:
        # Only traced when the flattened feature axis does not tile exactly
        # (chw % 128 != 0 or a ragged last feature chunk).
        rows = jax.lax.broadcasted_iota(jnp.int32, m1.shape, 1)
        lanes = jax.lax.broadcasted_iota(jnp.int32, m1.shape, 2)
        gidx = (k * row_block + rows) * _LANES + lanes
        valid = gidx < chw
        m1 = jnp.where(valid, m1, jnp.float32(0.0))
        m2s = jnp.where(valid, m2, jnp.float32(0.0))
        m2m = jnp.where(valid, m2, -jnp.inf)
    else:
        valid = None
        m2s = m2
        m2m = m2

    def _fsum(x):                                 # (B, r, 128) -> (B, 1) f32
        s = jnp.sum(jnp.sum(x, axis=2, keepdims=True), axis=1, keepdims=True)
        return s.reshape(bsz, 1)

    def _count(b):                                # bool -> exact int32 count (B, 1)
        # per-chunk count <= row_block*128 << 2**24, so the f32 sum is exact;
        # cross-chunk accumulation happens in int32.
        return _fsum(b.astype(jnp.float32)).astype(jnp.int32)

    # Soft-dice pieces (raw values, as in the reference); s1+s2 fused.
    inter_ref[...] += _fsum(m1 * m2s)
    s12_ref[...] += _fsum(m1 + m2s)

    # Running max over the feature axis.
    cmax = jnp.max(jnp.max(m2m, axis=2, keepdims=True),
                   axis=1, keepdims=True).reshape(bsz, 1)
    prev = rmax_ref[...]
    new_max = jnp.maximum(prev, cmax)
    increased = new_max > prev                    # (B, 1) bool

    # Binarized maps.  corr = sum[(m1>0.5) == (m2==gmax)]
    #                       = chw + 2*|P&G| - |P| - |G|,
    # where |G| / |P&G| only count positions AT the global max, so when the
    # running max increases the old counts simply reset to zero (exact).
    pbin = m1 > jnp.float32(0.5)                  # invalid positions already 0 -> False
    at_max = m2 == new_max.reshape(bsz, 1, 1)
    if valid is not None:
        at_max = jnp.logical_and(at_max, valid)

    g_cnt = _count(at_max)
    pg_cnt = _count(jnp.logical_and(at_max, pbin))
    p_cnt = _count(pbin)

    cg_ref[...] = jnp.where(increased, g_cnt, cg_ref[...] + g_cnt)
    cpg_ref[...] = jnp.where(increased, pg_cnt, cpg_ref[...] + pg_cnt)
    cp_ref[...] += p_cnt
    rmax_ref[...] = new_max

    @pl.when(k == pl.num_programs(1) - 1)
    def _finalize():
        corr = jnp.int32(chw) + 2 * cpg_ref[...] - cp_ref[...] - cg_ref[...]
        smooth = jnp.float32(1.0)
        dice = jnp.float32(2.0) * (inter_ref[...] + smooth) / (s12_ref[...] + smooth)
        # Reference: acc = corr / C; score = 1 if acc == 1 else dice.
        score = jnp.where(corr == jnp.int32(channels), jnp.float32(1.0), dice)
        loss_ref[...] = (jnp.float32(1.0) - score).reshape(bsz, 1, 1)


def soft_dice_loss(probs, targets, *, block_cap_bytes=None):
    """Pallas TPU implementation of SoftDiceLoss.forward(probs, targets)."""
    assert probs.shape == targets.shape
    N = int(probs.shape[0])
    channels = int(probs.shape[1])
    chw = int(np.prod(probs.shape[1:]))

    p = probs.reshape(N, chw)
    t = targets.reshape(N, chw)

    isz_p = np.dtype(probs.dtype).itemsize
    isz_t = np.dtype(targets.dtype).itemsize
    isz = max(isz_p, isz_t)
    R = pl.cdiv(chw, _LANES)

    # ---- generation-aware VMEM budget ------------------------------------
    try:
        info = pltpu.get_tpu_info()
        vmem_phys = int(getattr(info, "vmem_capacity_bytes", 0) or 0) or (64 << 20)
    except Exception:
        vmem_phys = 64 << 20                 # conservative (v7x-sized) fallback
    if block_cap_bytes is None:
        # Per-input block budget: 2 inputs x 2 pipeline buffers stay ~1/4 of VMEM.
        block_cap = max(1 << 20, vmem_phys // 16)
    else:
        block_cap = int(block_cap_bytes)
    vmem_limit = int(min(vmem_phys * 3 // 4, 112 << 20))

    bytes_per_sample = R * _LANES * isz
    sub = 8 * max(1, 4 // min(isz_p, isz_t))     # sublane granularity (bf16/int8 packing)

    # ---- choose (samples per block B, feature rows per chunk tr) ----------
    if bytes_per_sample <= block_cap:
        tr = R
        KT = 1
        B = max(1, min(N, block_cap // max(bytes_per_sample, 1),
                       _MAX_SAMPLES_PER_BLOCK))
    else:
        # Sample too large for one block: tile the flattened feature axis.
        B = 1
        tr = (block_cap // (_LANES * isz)) // sub * sub
        tr = int(max(sub, min(tr, R)))
        if R % tr != 0:
            # Prefer a nearby chunk size that divides R (avoids a ragged chunk).
            cand = tr - sub
            best = 0
            while cand >= sub:
                if R % cand == 0:
                    best = cand
                    break
                cand -= sub
            if best * 2 >= tr:
                tr = best
        KT = pl.cdiv(R, tr)

    # Avoid padding the batch: shrink B to a divisor of N when one is close.
    if B > 1 and N % B != 0:
        d = 1
        for cand in range(min(B, N), 0, -1):
            if N % cand == 0:
                d = cand
                break
        if d * 2 >= B:
            B = d
    NB = pl.cdiv(N, B)

    # v7x megacore: keep >= 2 batch blocks when there is enough work to split.
    if NB == 1 and N >= 2 and N % 2 == 0 and B * bytes_per_sample >= (1 << 21):
        B = N // 2
        NB = 2

    # ---- (rare) padding paths ---------------------------------------------
    chw_pad = R * _LANES
    if chw_pad != chw:
        # Feature length not a multiple of 128: zero-pad (kernel masks the tail).
        p = jnp.pad(p, ((0, 0), (0, chw_pad - chw)))
        t = jnp.pad(t, ((0, 0), (0, chw_pad - chw)))
    n_pad = NB * B
    if n_pad != N:
        # No good divisor of N near the VMEM budget: pad the batch (rare).
        p = jnp.pad(p, ((0, n_pad - N), (0, 0)))
        t = jnp.pad(t, ((0, n_pad - N), (0, 0)))

    p = p.reshape(n_pad, R, _LANES)
    t = t.reshape(n_pad, R, _LANES)

    # Masking needed if the (chunked) footprint exceeds the true feature length
    # (covers both the zero-padded tail and a ragged last feature chunk).
    mask_needed = (KT * tr * _LANES) != chw

    kernel = functools.partial(
        _soft_dice_kernel, channels=channels, chw=chw, row_block=tr,
        mask_needed=mask_needed)

    per_sample = pl.pallas_call(
        kernel,
        out_shape=jax.ShapeDtypeStruct((n_pad, 1, 1), jnp.float32),
        grid_spec=pltpu.PrefetchScalarGridSpec(
            num_scalar_prefetch=0,
            grid=(NB, KT),
            in_specs=[
                pl.BlockSpec((B, tr, _LANES), lambda i, k: (i, k, 0)),
                pl.BlockSpec((B, tr, _LANES), lambda i, k: (i, k, 0)),
            ],
            out_specs=pl.BlockSpec((B, 1, 1), lambda i, k: (i, 0, 0)),
            scratch_shapes=[
                pltpu.VMEM((B, 1), jnp.float32),   # running max of targets
                pltpu.VMEM((B, 1), jnp.int32),     # |targets == max|
                pltpu.VMEM((B, 1), jnp.int32),     # |targets == max & probs > .5|
                pltpu.VMEM((B, 1), jnp.int32),     # |probs > .5|
                pltpu.VMEM((B, 1), jnp.float32),   # sum(p*t)
                pltpu.VMEM((B, 1), jnp.float32),   # sum(p) + sum(t)
            ],
        ),
        compiler_params=pltpu.CompilerParams(
            dimension_semantics=("parallel", "arbitrary"),
            vmem_limit_bytes=vmem_limit,
        ),
    )(p, t)

    losses = per_sample.reshape(n_pad)[:N]
    return jnp.sum(losses) / jnp.float32(N)


def _reference(probs, targets):
    """Pure numpy re-implementation of the PyTorch forward (for checking)."""
    probs = np.asarray(probs, dtype=np.float64)
    targets = np.asarray(targets, dtype=np.float64)
    num = targets.shape[0]
    smooth = 1.0
    loss = 0.0
    for i in range(num):
        m1 = probs[i]
        m2 = targets[i]
        SR = (m1 > 0.5).astype(float)
        GT = (m2 == np.max(m2)).astype(float)
        intersection = m1 * m2
        corr = np.sum(SR == GT)
        acc = float(corr) / float(SR.shape[0])
        if acc == 1:
            score = 1.0
        else:
            score = 2.0 * (intersection.sum() + smooth) / (
                m1.sum() + m2.sum() + smooth)
        loss += 1.0 - score
    return loss / num


if __name__ == "__main__":
    key = jax.random.PRNGKey(0)
    k1, k2, k3, k4, k5, k6 = jax.random.split(key, 6)

    # Test 1: canonical small shape -> single feature chunk (KT == 1).
    N, C, H, W = 2, 4, 16, 16
    probs = jax.random.uniform(k1, (N, C, H, W), dtype=jnp.float32)
    targets = (jax.random.uniform(k2, (N, C, H, W)) > 0.5).astype(jnp.float32)
    out = jax.block_until_ready(jax.jit(soft_dice_loss)(probs, targets))
    ref = _reference(probs, targets)
    assert np.allclose(np.asarray(out), ref, rtol=1e-5, atol=1e-5), (out, ref)

    # Test 2: force the feature-axis tiling path (KT > 1) with a tiny block cap,
    # exercising the running-max / accumulator logic across chunks.
    N2, C2, H2, W2 = 2, 3, 32, 32
    p2 = jax.random.uniform(k3, (N2, C2, H2, W2), dtype=jnp.float32)
    t2 = (jax.random.uniform(k4, (N2, C2, H2, W2)) > 0.5).astype(jnp.float32)
    tiled = jax.jit(functools.partial(soft_dice_loss, block_cap_bytes=4096))
    out2 = jax.block_until_ready(tiled(p2, t2))
    ref2 = _reference(p2, t2)
    assert np.allclose(np.asarray(out2), ref2, rtol=1e-5, atol=1e-5), (out2, ref2)

    # Test 3: feature length not a multiple of 128 (exercises the masked tail).
    N3, C3, H3, W3 = 3, 3, 10, 10
    p3 = jax.random.uniform(k5, (N3, C3, H3, W3), dtype=jnp.float32)
    t3 = (jax.random.uniform(k6, (N3, C3, H3, W3)) > 0.5).astype(jnp.float32)
    out3 = jax.block_until_ready(jax.jit(soft_dice_loss)(p3, t3))
    ref3 = _reference(p3, t3)
    assert np.allclose(np.asarray(out3), ref3, rtol=1e-5, atol=1e-5), (out3, ref3)

    print("KERNEL_OK")
</pallas_src>

<mosaic_0001>
module attributes {stable_mosaic.version = 11 : i64} {
  func.func @_soft_dice_kernel(%arg0: i32, %arg1: i32, %arg2: memref<2x8x128xf32, #tpu.memory_space<vmem>>, %arg3: memref<2x8x128xf32, #tpu.memory_space<vmem>>, %arg4: memref<2x1x1xf32, #tpu.memory_space<vmem>>, %arg5: memref<2x1xf32, #tpu.memory_space<vmem>>, %arg6: memref<2x1xi32, #tpu.memory_space<vmem>>, %arg7: memref<2x1xi32, #tpu.memory_space<vmem>>, %arg8: memref<2x1xi32, #tpu.memory_space<vmem>>, %arg9: memref<2x1xf32, #tpu.memory_space<vmem>>, %arg10: memref<2x1xf32, #tpu.memory_space<vmem>>) attributes {dimension_semantics = [#tpu.dimension_semantics<parallel>, #tpu.dimension_semantics<arbitrary>], iteration_bounds = array<i64: 1, 1>, scalar_prefetch = 0 : i64, scratch_operands = 6 : i64, tpu.core_type = #tpu.core_type<tc>, window_params = [{transform_indices = @transform_0, window_bounds = array<i64: 2, 8, 128>}, {transform_indices = @transform_1, window_bounds = array<i64: 2, 8, 128>}, {transform_indices = @transform_2, window_bounds = array<i64: 2, 1, 1>}]} {
    %c0_i32 = arith.constant 0 : i32
    %0 = arith.cmpi eq, %arg1, %c0_i32 : i32
    %1 = arith.extui %0 : i1 to i32
    %c0_i32_0 = arith.constant 0 : i32
    %2 = arith.cmpi ne, %1, %c0_i32_0 : i32
    scf.if %2 {
      %cst_44 = arith.constant 0xFF800000 : f32
      %76 = vector.broadcast %cst_44 : f32 to vector<2x1xf32>
      %c0_45 = arith.constant 0 : index
      %c0_46 = arith.constant 0 : index
      %77 = vector.load %arg5[%c0_45, %c0_46] : memref<2x1xf32, #tpu.memory_space<vmem>>, vector<2x1xf32>
      tpu.vector_store %arg5[%c0_45, %c0_46], %76 {strides = array<i32>} : memref<2x1xf32, #tpu.memory_space<vmem>>, vector<2x1xf32>,
      %c0_i32_47 = arith.constant 0 : i32
      %78 = vector.broadcast %c0_i32_47 : i32 to vector<2x1xi32>
      %c0_48 = arith.constant 0 : index
      %c0_49 = arith.constant 0 : index
      %79 = vector.load %arg6[%c0_48, %c0_49] : memref<2x1xi32, #tpu.memory_space<vmem>>, vector<2x1xi32>
      tpu.vector_store %arg6[%c0_48, %c0_49], %78 {strides = array<i32>} : memref<2x1xi32, #tpu.memory_space<vmem>>, vector<2x1xi32>,
      %c0_i32_50 = arith.constant 0 : i32
      %80 = vector.broadcast %c0_i32_50 : i32 to vector<2x1xi32>
      %c0_51 = arith.constant 0 : index
      %c0_52 = arith.constant 0 : index
      %81 = vector.load %arg7[%c0_51, %c0_52] : memref<2x1xi32, #tpu.memory_space<vmem>>, vector<2x1xi32>
      tpu.vector_store %arg7[%c0_51, %c0_52], %80 {strides = array<i32>} : memref<2x1xi32, #tpu.memory_space<vmem>>, vector<2x1xi32>,
      %c0_i32_53 = arith.constant 0 : i32
      %82 = vector.broadcast %c0_i32_53 : i32 to vector<2x1xi32>
      %c0_54 = arith.constant 0 : index
      %c0_55 = arith.constant 0 : index
      %83 = vector.load %arg8[%c0_54, %c0_55] : memref<2x1xi32, #tpu.memory_space<vmem>>, vector<2x1xi32>
      tpu.vector_store %arg8[%c0_54, %c0_55], %82 {strides = array<i32>} : memref<2x1xi32, #tpu.memory_space<vmem>>, vector<2x1xi32>,
      %cst_56 = arith.constant 0.000000e+00 : f32
      %84 = vector.broadcast %cst_56 : f32 to vector<2x1xf32>
      %c0_57 = arith.constant 0 : index
      %c0_58 = arith.constant 0 : index
      %85 = vector.load %arg9[%c0_57, %c0_58] : memref<2x1xf32, #tpu.memory_space<vmem>>, vector<2x1xf32>
      tpu.vector_store %arg9[%c0_57, %c0_58], %84 {strides = array<i32>} : memref<2x1xf32, #tpu.memory_space<vmem>>, vector<2x1xf32>,
      %cst_59 = arith.constant 0.000000e+00 : f32
      %86 = vector.broadcast %cst_59 : f32 to vector<2x1xf32>
      %c0_60 = arith.constant 0 : index
      %c0_61 = arith.constant 0 : index
      %87 = vector.load %arg10[%c0_60, %c0_61] : memref<2x1xf32, #tpu.memory_space<vmem>>, vector<2x1xf32>
      tpu.vector_store %arg10[%c0_60, %c0_61], %86 {strides = array<i32>} : memref<2x1xf32, #tpu.memory_space<vmem>>, vector<2x1xf32>,
    } else {
    }
    %c0 = arith.constant 0 : index
    %c0_1 = arith.constant 0 : index
    %c0_2 = arith.constant 0 : index
    %3 = vector.load %arg2[%c0, %c0_1, %c0_2] : memref<2x8x128xf32, #tpu.memory_space<vmem>>, vector<2x8x128xf32>
    %c0_3 = arith.constant 0 : index
    %c0_4 = arith.constant 0 : index
    %c0_5 = arith.constant 0 : index
    %4 = vector.load %arg3[%c0_3, %c0_4, %c0_5] : memref<2x8x128xf32, #tpu.memory_space<vmem>>, vector<2x8x128xf32>
    %c0_6 = arith.constant 0 : index
    %c0_7 = arith.constant 0 : index
    %5 = vector.load %arg9[%c0_6, %c0_7] : memref<2x1xf32, #tpu.memory_space<vmem>>, vector<2x1xf32>
    %6 = arith.mulf %3, %4 : vector<2x8x128xf32>
    %cst = arith.constant dense<0.000000e+00> : vector<2x8xf32>
    %7 = vector.multi_reduction <add>, %6, %cst [2] : vector<2x8x128xf32> to vector<2x8xf32>
    %8 = vector.shape_cast %7 : vector<2x8xf32> to vector<2x8x1xf32>
    %cst_8 = arith.constant dense<0.000000e+00> : vector<2x1xf32>
    %9 = vector.multi_reduction <add>, %8, %cst_8 [1] : vector<2x8x1xf32> to vector<2x1xf32>
    %10 = vector.shape_cast %9 : vector<2x1xf32> to vector<2x1x1xf32>
    %11 = vector.shape_cast %10 : vector<2x1x1xf32> to vector<2x1xf32>
    %12 = arith.addf %5, %11 : vector<2x1xf32>
    %c0_9 = arith.constant 0 : index
    %c0_10 = arith.constant 0 : index
    %13 = vector.load %arg9[%c0_9, %c0_10] : memref<2x1xf32, #tpu.memory_space<vmem>>, vector<2x1xf32>
    tpu.vector_store %arg9[%c0_9, %c0_10], %12 {strides = array<i32>} : memref<2x1xf32, #tpu.memory_space<vmem>>, vector<2x1xf32>,
    %c0_11 = arith.constant 0 : index
    %c0_12 = arith.constant 0 : index
    %14 = vector.load %arg10[%c0_11, %c0_12] : memref<2x1xf32, #tpu.memory_space<vmem>>, vector<2x1xf32>
    %15 = arith.addf %3, %4 : vector<2x8x128xf32>
    %cst_13 = arith.constant dense<0.000000e+00> : vector<2x8xf32>
    %16 = vector.multi_reduction <add>, %15, %cst_13 [2] : vector<2x8x128xf32> to vector<2x8xf32>
    %17 = vector.shape_cast %16 : vector<2x8xf32> to vector<2x8x1xf32>
    %cst_14 = arith.constant dense<0.000000e+00> : vector<2x1xf32>
    %18 = vector.multi_reduction <add>, %17, %cst_14 [1] : vector<2x8x1xf32> to vector<2x1xf32>
    %19 = vector.shape_cast %18 : vector<2x1xf32> to vector<2x1x1xf32>
    %20 = vector.shape_cast %19 : vector<2x1x1xf32> to vector<2x1xf32>
    %21 = arith.addf %14, %20 : vector<2x1xf32>
    %c0_15 = arith.constant 0 : index
    %c0_16 = arith.constant 0 : index
    %22 = vector.load %arg10[%c0_15, %c0_16] : memref<2x1xf32, #tpu.memory_space<vmem>>, vector<2x1xf32>
    tpu.vector_store %arg10[%c0_15, %c0_16], %21 {strides = array<i32>} : memref<2x1xf32, #tpu.memory_space<vmem>>, vector<2x1xf32>,
    %cst_17 = arith.constant dense<0xFF800000> : vector<2x8xf32>
    %23 = vector.multi_reduction <maximumf>, %4, %cst_17 [2] : vector<2x8x128xf32> to vector<2x8xf32>
    %24 = vector.shape_cast %23 : vector<2x8xf32> to vector<2x8x1xf32>
    %cst_18 = arith.constant dense<0xFF800000> : vector<2x1xf32>
    %25 = vector.multi_reduction <maximumf>, %24, %cst_18 [1] : vector<2x8x1xf32> to vector<2x1xf32>
    %26 = vector.shape_cast %25 : vector<2x1xf32> to vector<2x1x1xf32>
    %27 = vector.shape_cast %26 : vector<2x1x1xf32> to vector<2x1xf32>
    %c0_19 = arith.constant 0 : index
    %c0_20 = arith.constant 0 : index
    %28 = vector.load %arg5[%c0_19, %c0_20] : memref<2x1xf32, #tpu.memory_space<vmem>>, vector<2x1xf32>
    %29 = arith.maximumf %28, %27 : vector<2x1xf32>
    %30 = arith.cmpf ogt, %29, %28 : vector<2x1xf32>
    %cst_21 = arith.constant 5.000000e-01 : f32
    %31 = vector.broadcast %cst_21 : f32 to vector<2x8x128xf32>
    %32 = arith.cmpf ogt, %3, %31 : vector<2x8x128xf32>
    %33 = vector.shape_cast %29 : vector<2x1xf32> to vector<2x1x1xf32>
    %34 = vector.broadcast %33 : vector<2x1x1xf32> to vector<2x8x128xf32>
    %35 = arith.cmpf oeq, %4, %34 : vector<2x8x128xf32>
    %36 = arith.extui %35 : vector<2x8x128xi1> to vector<2x8x128xi32>
    %37 = arith.sitofp %36 : vector<2x8x128xi32> to vector<2x8x128xf32>
    %cst_22 = arith.constant dense<0.000000e+00> : vector<2x8xf32>
    %38 = vector.multi_reduction <add>, %37, %cst_22 [2] : vector<2x8x128xf32> to vector<2x8xf32>
    %39 = vector.shape_cast %38 : vector<2x8xf32> to vector<2x8x1xf32>
    %cst_23 = arith.constant dense<0.000000e+00> : vector<2x1xf32>
    %40 = vector.multi_reduction <add>, %39, %cst_23 [1] : vector<2x8x1xf32> to vector<2x1xf32>
    %41 = vector.shape_cast %40 : vector<2x1xf32> to vector<2x1x1xf32>
    %42 = vector.shape_cast %41 : vector<2x1x1xf32> to vector<2x1xf32>
    %43 = arith.fptosi %42 : vector<2x1xf32> to vector<2x1xi32>
    %44 = arith.andi %35, %32 : vector<2x8x128xi1>
    %45 = arith.extui %44 : vector<2x8x128xi1> to vector<2x8x128xi32>
    %46 = arith.sitofp %45 : vector<2x8x128xi32> to vector<2x8x128xf32>
    %cst_24 = arith.constant dense<0.000000e+00> : vector<2x8xf32>
    %47 = vector.multi_reduction <add>, %46, %cst_24 [2] : vector<2x8x128xf32> to vector<2x8xf32>
    %48 = vector.shape_cast %47 : vector<2x8xf32> to vector<2x8x1xf32>
    %cst_25 = arith.constant dense<0.000000e+00> : vector<2x1xf32>
    %49 = vector.multi_reduction <add>, %48, %cst_25 [1] : vector<2x8x1xf32> to vector<2x1xf32>
    %50 = vector.shape_cast %49 : vector<2x1xf32> to vector<2x1x1xf32>
    %51 = vector.shape_cast %50 : vector<2x1x1xf32> to vector<2x1xf32>
    %52 = arith.fptosi %51 : vector<2x1xf32> to vector<2x1xi32>
    %53 = arith.extui %32 : vector<2x8x128xi1> to vector<2x8x128xi32>
    %54 = arith.sitofp %53 : vector<2x8x128xi32> to vector<2x8x128xf32>
    %cst_26 = arith.constant dense<0.000000e+00> : vector<2x8xf32>
    %55 = vector.multi_reduction <add>, %54, %cst_26 [2] : vector<2x8x128xf32> to vector<2x8xf32>
    %56 = vector.shape_cast %55 : vector<2x8xf32> to vector<2x8x1xf32>
    %cst_27 = arith.constant dense<0.000000e+00> : vector<2x1xf32>
    %57 = vector.multi_reduction <add>, %56, %cst_27 [1] : vector<2x8x1xf32> to vector<2x1xf32>
    %58 = vector.shape_cast %57 : vector<2x1xf32> to vector<2x1x1xf32>
    %59 = vector.shape_cast %58 : vector<2x1x1xf32> to vector<2x1xf32>
    %60 = arith.fptosi %59 : vector<2x1xf32> to vector<2x1xi32>
    %c0_28 = arith.constant 0 : index
    %c0_29 = arith.constant 0 : index
    %61 = vector.load %arg6[%c0_28, %c0_29] : memref<2x1xi32, #tpu.memory_space<vmem>>, vector<2x1xi32>
    %62 = arith.addi %61, %43 : vector<2x1xi32>
    %63 = arith.select %30, %43, %62 : vector<2x1xi1>, vector<2x1xi32>
    %c0_30 = arith.constant 0 : index
    %c0_31 = arith.constant 0 : index
    %64 = vector.load %arg6[%c0_30, %c0_31] : memref<2x1xi32, #tpu.memory_space<vmem>>, vector<2x1xi32>
    tpu.vector_store %arg6[%c0_30, %c0_31], %63 {strides = array<i32>} : memref<2x1xi32, #tpu.memory_space<vmem>>, vector<2x1xi32>,
    %c0_32 = arith.constant 0 : index
    %c0_33 = arith.constant 0 : index
    %65 = vector.load %arg7[%c0_32, %c0_33] : memref<2x1xi32, #tpu.memory_space<vmem>>, vector<2x1xi32>
    %66 = arith.addi %65, %52 : vector<2x1xi32>
    %67 = arith.select %30, %52, %66 : vector<2x1xi1>, vector<2x1xi32>
    %c0_34 = arith.constant 0 : index
    %c0_35 = arith.constant 0 : index
    %68 = vector.load %arg7[%c0_34, %c0_35] : memref<2x1xi32, #tpu.memory_space<vmem>>, vector<2x1xi32>
    tpu.vector_store %arg7[%c0_34, %c0_35], %67 {strides = array<i32>} : memref<2x1xi32, #tpu.memory_space<vmem>>, vector<2x1xi32>,
    %c0_36 = arith.constant 0 : index
    %c0_37 = arith.constant 0 : index
    %69 = vector.load %arg8[%c0_36, %c0_37] : memref<2x1xi32, #tpu.memory_space<vmem>>, vector<2x1xi32>
    %70 = arith.addi %69, %60 : vector<2x1xi32>
    %c0_38 = arith.constant 0 : index
    %c0_39 = arith.constant 0 : index
    %71 = vector.load %arg8[%c0_38, %c0_39] : memref<2x1xi32, #tpu.memory_space<vmem>>, vector<2x1xi32>
    tpu.vector_store %arg8[%c0_38, %c0_39], %70 {strides = array<i32>} : memref<2x1xi32, #tpu.memory_space<vmem>>, vector<2x1xi32>,
    %c0_40 = arith.constant 0 : index
    %c0_41 = arith.constant 0 : index
    %72 = vector.load %arg5[%c0_40, %c0_41] : memref<2x1xf32, #tpu.memory_space<vmem>>, vector<2x1xf32>
    tpu.vector_store %arg5[%c0_40, %c0_41], %29 {strides = array<i32>} : memref<2x1xf32, #tpu.memory_space<vmem>>, vector<2x1xf32>,
    %c0_i32_42 = arith.constant 0 : i32
    %73 = arith.cmpi eq, %arg1, %c0_i32_42 : i32
    %74 = arith.extui %73 : i1 to i32
    %c0_i32_43 = arith.constant 0 : i32
    %75 = arith.cmpi ne, %74, %c0_i32_43 : i32
    scf.if %75 {
      %c0_44 = arith.constant 0 : index
      %c0_45 = arith.constant 0 : index
      %76 = vector.load %arg7[%c0_44, %c0_45] : memref<2x1xi32, #tpu.memory_space<vmem>>, vector<2x1xi32>
      %c2_i32 = arith.constant 2 : i32
      %77 = vector.broadcast %c2_i32 : i32 to vector<2x1xi32>
      %78 = arith.muli %77, %76 : vector<2x1xi32>
      %c1024_i32 = arith.constant 1024 : i32
      %79 = vector.broadcast %c1024_i32 : i32 to vector<2x1xi32>
      %80 = arith.addi %79, %78 : vector<2x1xi32>
      %c0_46 = arith.constant 0 : index
      %c0_47 = arith.constant 0 : index
      %81 = vector.load %arg8[%c0_46, %c0_47] : memref<2x1xi32, #tpu.memory_space<vmem>>, vector<2x1xi32>
      %82 = arith.subi %80, %81 : vector<2x1xi32>
      %c0_48 = arith.constant 0 : index
      %c0_49 = arith.constant 0 : index
      %83 = vector.load %arg6[%c0_48, %c0_49] : memref<2x1xi32, #tpu.memory_space<vmem>>, vector<2x1xi32>
      %84 = arith.subi %82, %83 : vector<2x1xi32>
      %c0_50 = arith.constant 0 : index
      %c0_51 = arith.constant 0 : index
      %85 = vector.load %arg9[%c0_50, %c0_51] : memref<2x1xf32, #tpu.memory_space<vmem>>, vector<2x1xf32>
      %cst_52 = arith.constant 1.000000e+00 : f32
      %86 = vector.broadcast %cst_52 : f32 to vector<2x1xf32>
      %87 = arith.addf %85, %86 : vector<2x1xf32>
      %cst_53 = arith.constant 2.000000e+00 : f32
      %88 = vector.broadcast %cst_53 : f32 to vector<2x1xf32>
      %89 = arith.mulf %88, %87 : vector<2x1xf32>
      %c0_54 = arith.constant 0 : index
      %c0_55 = arith.constant 0 : index
      %90 = vector.load %arg10[%c0_54, %c0_55] : memref<2x1xf32, #tpu.memory_space<vmem>>, vector<2x1xf32>
      %cst_56 = arith.constant 1.000000e+00 : f32
      %91 = vector.broadcast %cst_56 : f32 to vector<2x1xf32>
      %92 = arith.addf %90, %91 : vector<2x1xf32>
      %93 = arith.divf %89, %92 : vector<2x1xf32>
      %c4_i32 = arith.constant 4 : i32
      %94 = vector.broadcast %c4_i32 : i32 to vector<2x1xi32>
      %95 = arith.cmpi eq, %84, %94 : vector<2x1xi32>
      %cst_57 = arith.constant 1.000000e+00 : f32
      %96 = vector.broadcast %cst_57 : f32 to vector<2x1xf32>
      %97 = arith.select %95, %96, %93 : vector<2x1xi1>, vector<2x1xf32>
      %cst_58 = arith.constant 1.000000e+00 : f32
      %98 = vector.broadcast %cst_58 : f32 to vector<2x1xf32>
      %99 = arith.subf %98, %97 : vector<2x1xf32>
      %100 = vector.shape_cast %99 : vector<2x1xf32> to vector<2x1x1xf32>
      %c0_59 = arith.constant 0 : index
      %c0_60 = arith.constant 0 : index
      %c0_61 = arith.constant 0 : index
      %101 = vector.load %arg4[%c0_59, %c0_60, %c0_61] : memref<2x1x1xf32, #tpu.memory_space<vmem>>, vector<2x1x1xf32>
      tpu.vector_store %arg4[%c0_59, %c0_60, %c0_61], %100 {strides = array<i32>} : memref<2x1x1xf32, #tpu.memory_space<vmem>>, vector<2x1x1xf32>,
    } else {
    }
    return
  }
  func.func @transform_0(%arg0: i32, %arg1: i32) -> (i32, i32, i32) {
    %c0_i32 = arith.constant 0 : i32
    %c0_i32_0 = arith.constant 0 : i32
    return %arg0, %arg1, %c0_i32 : i32, i32, i32
  }
  func.func @transform_1(%arg0: i32, %arg1: i32) -> (i32, i32, i32) {
    %c0_i32 = arith.constant 0 : i32
    %c0_i32_0 = arith.constant 0 : i32
    return %arg0, %arg1, %c0_i32 : i32, i32, i32
  }
  func.func @transform_2(%arg0: i32, %arg1: i32) -> (i32, i32, i32) {
    %c0_i32 = arith.constant 0 : i32
    %c0_i32_0 = arith.constant 0 : i32
    %c0_i32_1 = arith.constant 0 : i32
    return %arg0, %c0_i32, %c0_i32_0 : i32, i32, i32
  }
}

</mosaic_0001>

<bundles_post_ra>
// kernel: soft_dice_loss.1
= control target key start
LH: loop header
LB: loop body
LE: loop exit
PB: predicated region body
PF: predicated region fallthrough
CT: control target
= control target key end

     0   :  { %vm15_vm0 = vcmask 1024   ;;  %v305_v2 = vmov -inf   ;;  %v306_v3 = vmov 0   ;;  %v307_v7 = vmov 0.0   ;;  %s421_s1 = inlined_call_operand.vmem [shape: f32[2,8,128], index: 1, kind: input, shape index: {}]   ;;  %s422_s0 = inlined_call_operand.vmem [shape: f32[2,8,128], index: 0, kind: input, shape index: {}]   ;;  %s423_s2 = inlined_call_operand.vmem [shape: f32[2,1,1], index: 2, kind: output, shape index: {}]  }
   0x1   :  { %v327_v0 = vld [vmem:[%s421_s1] sm:$0xff]  ;;  %v333_v1 = vld [vmem:[%s421_s1 + $0x8] sm:$0xff]  ;;  %16 = vst.msk [vmem:[#allocation2] sm:$0x3] %vm15_vm0, %v305_v2  ;;  %301 = vset.pattern.permute.xlu1 %v306_v3  ;;  %17 = vst.msk [vmem:[#allocation3] sm:$0x3] %vm15_vm0, %v306_v3  ;;  %302 = vset.pattern.permute.xlu0 %v306_v3  ;;  %v107_v20 = vlaneseq }
   0x2   :  { %78 = vmax.xlane.f32.xlu0 %v327_v0  ;;  %18 = vst.msk [vmem:[#allocation4] sm:$0x3] %vm15_vm0, %v306_v3  ;;  %19 = vst.msk [vmem:[#allocation5] sm:$0x3] %vm15_vm0, %v306_v3  ;;  %v343_v4 = vld [vmem:[%s422_s0] sm:$0xff]  ;;  %v350_v6 = vld [vmem:[%s422_s0 + $0x8] sm:$0xff] }
   0x3   :  { %v54_v5 = vadd.f32 %v327_v0, %v343_v4  ;;  %vm101_vm1 = vcmp.gt.f32.partialorder %v343_v4, 0.5  ;;  %vm102_vm2 = vcmp.gt.f32.partialorder %v350_v6, 0.5  ;;  %20 = vst.msk [vmem:[#allocation6] sm:$0x3] %vm15_vm0, %v307_v7  ;;  %21 = vst.msk [vmem:[#allocation7] sm:$0x3] %vm15_vm0, %v307_v7  ;;  %v55_v40 = vadd.f32 %v333_v1, %v350_v6 }
   0x4   :  { %v283_v8 = vsel %vm101_vm1, 1.0, %v307_v7  ;;  %v284_v9 = vsel %vm102_vm2, 1.0, %v307_v7  ;;  %v308_v18 = vmov 1966171168   ;;  %v108_v25 = vshrl.u32 %v107_v20, 7 }
   0x5   :  { %v105_v19 = vunpack.c.l.s4 %v308_v18  ;;  %vm47_vm3 = vcmask 1041409   ;;  %vm272_vm10 = vcmask 0  }
   0x6   :  { %80 = vmax.xlane.f32.xlu0 %v333_v1  ;;  %v128_v34 = vsub.s32 0, %v108_v25 }
   0x7   :  { %v106_v24 = vunpack.c.0.s8 %v105_v19 }
   0x8   :  { %v364_v29 = vld [vmem:[#allocation2] sm:$0x3] }
   0x9   :  { %v366_v30 = vsub.s32 %v106_v24, %v108_v25  ;;  %v222_v59 = vld [vmem:[#allocation5] sm:$0x3] }
   0xa   :  { %56 = vadd.xlane.f32.xlu0 %v54_v5 }
   0xe   :  { %194 = vadd.xlane.f32.xlu0 %v283_v8 }
  0x12   :  { %196 = vadd.xlane.f32.xlu0 %v284_v9 }
  0x8f   :  { %v79_v10 = vpop.xlane.xlu0 %78 }
  0x90   :  { %v82_v11 = vrot.slane %v79_v10, 4 }
  0x92   :  { %v83_v12 = vmax.f32 %v79_v10, %v82_v11  ;;  %v27_v10 = vmul.f32 %v327_v0, %v343_v4  ;;  %v28_v11 = vmul.f32 %v333_v1, %v350_v6 }
  0x93   :  { %v81_v13 = vpop.xlane.xlu0 %80 }
  0x94   :  { %v84_v14 = vrot.slane %v83_v12, 2  ;;  %v88_v15 = vrot.slane %v81_v13, 4 }
  0x96   :  { %v85_v16 = vmax.f32 %v83_v12, %v84_v14  ;;  %v89_v17 = vmax.f32 %v81_v13, %v88_v15 }
  0x97   :  { %v57_v41 = vpop.xlane.xlu0 %56 }
  0x98   :  { %v90_v21 = vrot.slane %v89_v17, 2  ;;  %v86_v22 = vrot.slane %v85_v16, 1  ;;  %v60_v12 = vrot.slane %v57_v41, 4 }
  0x9a   :  { %v91_v23 = vmax.f32 %v89_v17, %v90_v21  ;;  %v87_v27 = vmax.f32 %v85_v16, %v86_v22  ;;  %v61_v13 = vadd.f32 %v60_v12, %v57_v41 }
  0x9b   :  { %v195_v42 = vpop.xlane.xlu0 %194 }
  0x9c   :  { %v92_v26 = vrot.slane %v91_v23, 1  ;;  %v198_v43 = vrot.slane %v195_v42, 4  ;;  %v62_v14 = vrot.slane %v61_v13, 2 }
  0x9e   :  { %v93_v28 = vmax.f32 %v91_v23, %v92_v26  ;;  %v199_v44 = vadd.f32 %v198_v43, %v195_v42  ;;  %v63_v16 = vadd.f32 %v62_v14, %v61_v13  ;;  %v53_v23 = vld [vmem:[#allocation7] sm:$0x3]  ;;  %v217_v14 = vld [vmem:[#allocation4] sm:$0x3] }
  0x9f   :  { %v197_v45 = vpop.xlane.xlu0 %196 }
  0xa0   :  { %v97_v31 = vsel %vm47_vm3, %v93_v28, %v87_v27  ;;  %v200_v46 = vrot.slane %v199_v44, 2  ;;  %v204_v47 = vrot.slane %v197_v45, 4  ;;  %v64_v19 = vrot.slane %v63_v16, 1 }
  0xa1   :  { %v370_v32 = vmax.f32 %v364_v29, %v97_v31 }
  0xa2   :  { %v201_v48 = vadd.f32 %v200_v46, %v199_v44  ;;  %v205_v49 = vadd.f32 %v204_v47, %v197_v45 }
  0xa3   :  { %v110_v33 = vrot.slane %v370_v32, %v366_v30  ;;  %226 = vst.msk [vmem:[#allocation2] sm:$0x3] %vm15_vm0, %v370_v32  ;;  %vm100_vm4 = vcmp.gt.f32.partialorder %v370_v32, %v364_v29 }
  0xa4   :  { %v202_v50 = vrot.slane %v201_v48, 1  ;;  %v206_v51 = vrot.slane %v205_v49, 2 }
  0xa5   :  { %v118_v35 = vrot.slane %v110_v33, %v366_v30  ;;  %v111_v36 = vcombine.high %v110_v33, %v110_v33 }
  0xa6   :  { %v203_v52 = vadd.f32 %v202_v50, %v201_v48  ;;  %v207_v53 = vadd.f32 %v206_v51, %v205_v49 }
  0xa7   :  { %v129_v37 = vrot.slane %v118_v35, %v128_v34  ;;  %v125_v38 = vrot.slane %v111_v36, %v366_v30 }
  0xa8   :  { %v293_v54 = vtrunc.f32 %v203_v52  ;;  %v208_v55 = vrot.slane %v207_v53, 1 }
  0xa9   :  { %135 = vperm.xlu1 %301, %v129_v37   ;;  %v133_v39 = vrot.slane %v125_v38, %v128_v34 }
  0xaa   :  { %v209_v56 = vadd.f32 %v208_v55, %v207_v53  ;;  %v294_v57 = vcvt.f32.s32 %v293_v54 }
  0xac   :  { %v295_v58 = vtrunc.f32 %v209_v56 }
  0xad   :  { %139 = vperm.xlu1 %301, %v133_v39  }
  0xae   :  { %v296_v60 = vcvt.f32.s32 %v295_v58 }
  0xb0   :  { %v223_v61 = vsel %vm47_vm3, %v296_v60, %v294_v57 }
  0xb1   :  { %v224_v62 = vadd.s32 %v223_v61, %v222_v59 }
  0xb3   :  { %225 = vst.msk [vmem:[#allocation5] sm:$0x3] %vm15_vm0, %v224_v62 }
  0xd1   :  { %58 = vadd.xlane.f32.xlu1 %v55_v40 }
 0x128   :  { %v136_v63 = vpop.permute.xlu1 %135 }
 0x129   :  { %vm142_vm5 = vcmp.eq.f32.partialorder %v327_v0, %v136_v63  ;;  %v212_v63 = vld [vmem:[#allocation3] sm:$0x3] }
 0x12a   :  { %v279_v2 = vsel %vm142_vm5, 1.0, %v307_v7  ;;  %vm166_vm6 = vmand %vm142_vm5, %vm101_vm1 }
 0x12b   :  { %148 = vadd.xlane.f32.xlu0 %v279_v2  ;;  %v281_v5 = vsel %vm166_vm6, 1.0, %v307_v7 }
 0x12c   :  { %v140_v3 = vpop.permute.xlu1 %139 }
 0x12d   :  { %vm143_vm7 = vcmp.eq.f32.partialorder %v333_v1, %v140_v3 }
 0x12e   :  { %v280_v8 = vsel %vm143_vm7, 1.0, %v307_v7  ;;  %vm167_vm8 = vmand %vm143_vm7, %vm102_vm2 }
 0x12f   :  { %172 = vadd.xlane.f32.xlu0 %v281_v5  ;;  %v282_v9 = vsel %vm167_vm8, 1.0, %v307_v7  ;;  %v65_v7 = vadd.f32 %v64_v19, %v63_v16 }
 0x133   :  { %150 = vadd.xlane.f32.xlu0 %v280_v8 }
 0x137   :  { %174 = vadd.xlane.f32.xlu0 %v282_v9 }
 0x13b   :  { %29 = vadd.xlane.f32.xlu0 %v27_v10 }
 0x13f   :  { %31 = vadd.xlane.f32.xlu0 %v28_v11 }
 0x15e   :  { %v59_v15 = vpop.xlane.xlu1 %58 }
 0x15f   :  { %v66_v17 = vrot.slane %v59_v15, 4 }
 0x161   :  { %v67_v18 = vadd.f32 %v66_v17, %v59_v15 }
 0x163   :  { %v68_v20 = vrot.slane %v67_v18, 2 }
 0x165   :  { %v69_v21 = vadd.f32 %v68_v20, %v67_v18 }
 0x167   :  { %v70_v22 = vrot.slane %v69_v21, 1 }
 0x169   :  { %v71_v24 = vadd.f32 %v70_v22, %v69_v21 }
 0x16b   :  { %v74_v0 = vsel %vm47_vm3, %v71_v24, %v65_v7 }
 0x16c   :  { %v76_v4 = vadd.f32 %v74_v0, %v53_v23  ;;  %v26_v23 = vld [vmem:[#allocation6] sm:$0x3] }
 0x16e   :  { %77 = vst.msk [vmem:[#allocation7] sm:$0x3] %vm15_vm0, %v76_v4 }
 0x175   :  { %v240_v21 = vld [vmem:[#allocation7] sm:$0x3] }
 0x176   :  { %v241_v4 = vadd.f32 1.0, %v240_v21 }
 0x178   :  { %303 = vrcp.f32 %v241_v4 }
 0x182   :  { %v304_v29 = vpop.eup %303 }
 0x1b8   :  { %v149_v1 = vpop.xlane.xlu0 %148 }
 0x1b9   :  { %v152_v6 = vrot.slane %v149_v1, 4 }
 0x1bb   :  { %v153_v25 = vadd.f32 %v152_v6, %v149_v1 }
 0x1bc   :  { %v173_v26 = vpop.xlane.xlu0 %172 }
 0x1bd   :  { %v154_v27 = vrot.slane %v153_v25, 2  ;;  %v176_v28 = vrot.slane %v173_v26, 4 }
 0x1bf   :  { %v155_v31 = vadd.f32 %v154_v27, %v153_v25  ;;  %v177_v33 = vadd.f32 %v176_v28, %v173_v26 }
 0x1c0   :  { %v151_v34 = vpop.xlane.xlu0 %150 }
 0x1c1   :  { %v178_v35 = vrot.slane %v177_v33, 2  ;;  %v158_v36 = vrot.slane %v151_v34, 4  ;;  %v156_v37 = vrot.slane %v155_v31, 1 }
 0x1c3   :  { %v179_v38 = vadd.f32 %v178_v35, %v177_v33  ;;  %v159_v39 = vadd.f32 %v158_v36, %v151_v34  ;;  %v157_v43 = vadd.f32 %v156_v37, %v155_v31  ;;  %v233_v31 = vld [vmem:[#allocation5] sm:$0x3] }
 0x1c4   :  { %v175_v40 = vpop.xlane.xlu0 %174 }
 0x1c5   :  { %v160_v41 = vrot.slane %v159_v39, 2  ;;  %v182_v42 = vrot.slane %v175_v40, 4  ;;  %v180_v44 = vrot.slane %v179_v38, 1  ;;  %v285_v51 = vtrunc.f32 %v157_v43 }
 0x1c7   :  { %v161_v45 = vadd.f32 %v160_v41, %v159_v39  ;;  %v183_v46 = vadd.f32 %v182_v42, %v175_v40  ;;  %v181_v52 = vadd.f32 %v180_v44, %v179_v38  ;;  %v286_v61 = vcvt.f32.s32 %v285_v51 }
 0x1c8   :  { %v30_v47 = vpop.xlane.xlu0 %29 }
 0x1c9   :  { %v162_v48 = vrot.slane %v161_v45, 1  ;;  %v184_v49 = vrot.slane %v183_v46, 2  ;;  %v33_v50 = vrot.slane %v30_v47, 4  ;;  %v289_v62 = vtrunc.f32 %v181_v52 }
 0x1cb   :  { %v163_v53 = vadd.f32 %v162_v48, %v161_v45  ;;  %v185_v54 = vadd.f32 %v184_v49, %v183_v46  ;;  %v34_v55 = vadd.f32 %v33_v50, %v30_v47  ;;  %v290_v13 = vcvt.f32.s32 %v289_v62 }
 0x1cc   :  { %v32_v56 = vpop.xlane.xlu0 %31 }
 0x1cd   :  { %v287_v57 = vtrunc.f32 %v163_v53  ;;  %v186_v58 = vrot.slane %v185_v54, 1  ;;  %v35_v59 = vrot.slane %v34_v55, 2  ;;  %v39_v60 = vrot.slane %v32_v56, 4 }
 0x1cf   :  { %v288_v2 = vcvt.f32.s32 %v287_v57  ;;  %v187_v3 = vadd.f32 %v186_v58, %v185_v54  ;;  %v36_v5 = vadd.f32 %v35_v59, %v34_v55  ;;  %v40_v8 = vadd.f32 %v39_v60, %v32_v56 }
 0x1d1   :  { %v213_v9 = vsel %vm47_vm3, %v288_v2, %v286_v61  ;;  %v291_v10 = vtrunc.f32 %v187_v3  ;;  %v41_v11 = vrot.slane %v40_v8, 2  ;;  %v37_v16 = vrot.slane %v36_v5, 1 }
 0x1d2   :  { %v214_v12 = vadd.s32 %v213_v9, %v212_v63 }
 0x1d3   :  { %v292_v15 = vcvt.f32.s32 %v291_v10  ;;  %v42_v17 = vadd.f32 %v41_v11, %v40_v8  ;;  %v38_v22 = vadd.f32 %v37_v16, %v36_v5 }
 0x1d4   :  { %v215_v18 = vsel %vm100_vm4, %v213_v9, %v214_v12 }
 0x1d5   :  { %216 = vst.msk [vmem:[#allocation3] sm:$0x3] %vm15_vm0, %v215_v18  ;;  %v218_v19 = vsel %vm47_vm3, %v292_v15, %v290_v13  ;;  %v43_v20 = vrot.slane %v42_v17, 1 }
 0x1d6   :  { %v219_v7 = vadd.s32 %v218_v19, %v217_v14 }
 0x1d7   :  { %v44_v24 = vadd.f32 %v43_v20, %v42_v17 }
 0x1d8   :  { %v220_v0 = vsel %vm100_vm4, %v218_v19, %v219_v7 }
 0x1d9   :  { %221 = vst.msk [vmem:[#allocation4] sm:$0x3] %vm15_vm0, %v220_v0  ;;  %v48_v1 = vsel %vm47_vm3, %v44_v24, %v38_v22 }
 0x1da   :  { %v50_v6 = vadd.f32 %v48_v1, %v26_v23 }
 0x1dc   :  { %52 = vst.msk [vmem:[#allocation6] sm:$0x3] %vm15_vm0, %v50_v6  ;;  %v235_v35 = vld [vmem:[#allocation3] sm:$0x3] }
 0x1e0   :  { %v230_v25 = vld [vmem:[#allocation4] sm:$0x3] }
 0x1e1   :  { %v231_v26 = vmul.u32 2, %v230_v25 }
 0x1e3   :  { %v232_v27 = vadd.s32 1024, %v231_v26  ;;  %v237_v28 = vld [vmem:[#allocation6] sm:$0x3] }
 0x1e4   :  { %v238_v33 = vadd.f32 1.0, %v237_v28 }
 0x1e5   :  { %v234_v34 = vsub.s32 %v232_v27, %v233_v31 }
 0x1e6   :  { %v239_v36 = vmul.f32 2.0, %v238_v33 }
 0x1e7   :  { %v236_v32 = vsub.s32 %v234_v34, %v235_v35 }
 0x1e8   :  { %v243_v37 = vmul.f32 %v304_v29, %v239_v36 }
 0x1e9   :  { %vm244_vm9 = vcmp.eq.s32.totalorder %v236_v32, 4 }
 0x1ea   :  { %v245_v38 = vsel %vm244_vm9, 1.0, %v243_v37 }
 0x1eb   :  { %v246_v39 = vsub.f32 1.0, %v245_v38 }
 0x1ed   :  { %v254_v40 = vrot.slane %v246_v39, %v366_v30 }
 0x1ef   :  { %v255_v41 = vcombine.high %v254_v40, %v254_v40  ;;  %v262_v42 = vrot.slane %v254_v40, %v366_v30 }
 0x1f1   :  { %v269_v43 = vrot.slane %v255_v41, %v366_v30  ;;  %273 = vst.msk [vmem:[%s423_s2] sm:$0x1] %vm272_vm10, %v262_v42 }
 0x1f3   :  { %274 = vst.msk [vmem:[%s423_s2 + $0x1] sm:$0x1] %vm272_vm10, %v269_v43 }

</bundles_post_ra>
